<compile_context>
chip_gen: v7x
topology: tpu7x:2x2x1
jax: 0.10.0
libtpu: 0.0.40
codegen_flags: <defaults>
</compile_context>

<pallas_src>
import functools

import jax
import jax.numpy as jnp
import numpy as np
from jax.experimental import pallas as pl
from jax.experimental.pallas import tpu as pltpu

# --- module hyper-parameters (small, consistent with the module) -------------
NUM_FEATURES = 4          # number_of_features
PLANE_RES = 16            # plane_resolution
INIT_SIGMA = 0.1
LBOUND = 1.0
N_POINTS = 128            # number of query coordinates
NUM_PLANES = 3
TILE_N = 128              # point tile (lane dimension)


def _triplane_kernel(coords_ref, planes_ref, out_ref, *, H, W, C, proj_coefs):
    """coords_ref: (3, TN) f32; planes_ref: (P, C*H, W) f32; out_ref: (P*C, TN) f32."""
    tn = coords_ref.shape[1]
    P = planes_ref.shape[0]

    # unit cube -> [-1, 1]; the (*lbound, /lbound) pair in the module cancels.
    c = coords_ref[...] * 2.0 - 1.0                           # (3, tn)

    # height / width index ladders, points on lanes (shared across planes)
    i_idx = jax.lax.broadcasted_iota(jnp.int32, (H, tn), 0)   # (H, tn)
    j_idx = jax.lax.broadcasted_iota(jnp.int32, (W, tn), 0)   # (W, tn)

    def project(coefs):
        # proj = sum_d axes[d] * c[d]; trivial basis -> single row select / FMA.
        acc = None
        for d, a in enumerate(coefs):
            if a == 0.0:
                continue
            term = c[d:d + 1, :] if a == 1.0 else a * c[d:d + 1, :]
            acc = term if acc is None else acc + term
        if acc is None:
            acc = jnp.zeros((1, tn), jnp.float32)
        return acc                                            # (1, tn)

    results = []
    for p in range(P):
        gx = project(proj_coefs[p][0])                        # width coord in [-1, 1]
        gy = project(proj_coefs[p][1])                        # height coord in [-1, 1]

        # grid_sample: bilinear, align_corners=True, padding_mode='border'
        ix = jnp.clip((gx + 1.0) * 0.5 * (W - 1), 0.0, float(W - 1))
        iy = jnp.clip((gy + 1.0) * 0.5 * (H - 1), 0.0, float(H - 1))
        x0f = jnp.floor(ix)
        y0f = jnp.floor(iy)
        fx = ix - x0f                                         # (1, tn)
        fy = iy - y0f
        x0 = x0f.astype(jnp.int32)
        y0 = y0f.astype(jnp.int32)
        x1 = jnp.minimum(x0 + 1, W - 1)
        y1 = jnp.minimum(y0 + 1, H - 1)

        # separable one-hot-pair bilinear weights (border: x0==x1 -> weight 1)
        wx = jnp.where(j_idx == x0, 1.0 - fx, 0.0) + jnp.where(j_idx == x1, fx, 0.0)  # (W, tn)
        wy = jnp.where(i_idx == y0, 1.0 - fy, 0.0) + jnp.where(i_idx == y1, fy, 0.0)  # (H, tn)

        # MXU: contract width -> (C*H, tn); VPU: weight by wy and reduce height.
        m = jnp.dot(planes_ref[p], wx, preferred_element_type=jnp.float32)   # (C*H, tn)
        m = m.reshape(C, H, tn) * wy[None, :, :]                              # (C, H, tn)
        results.append(jnp.sum(m, axis=1))                                    # (C, tn)

    # Single lane-dense store of the whole (P*C, tn) tile.
    out_ref[...] = jnp.concatenate(results, axis=0)


def triplane_forward(coords, planes_features, plane_axes):
    """coords: (N, 3) in [0,1]; planes_features: (P, C, H, W); plane_axes: (P, 3, 2).
    Returns (N, P*C), matching TriPlaneVolume.forward."""
    N = coords.shape[0]
    P, C, H, W = planes_features.shape

    # Static projection coefficients baked at trace time (plane_axes is a fixed
    # buffer; proj[k] = sum_d axes[d, k] * coord[d]).
    ax = np.asarray(plane_axes)                               # (P, 3, 2) concrete
    proj_coefs = tuple(
        tuple(tuple(float(ax[p, d, k]) for d in range(3)) for k in range(2))
        for p in range(P)
    )

    # Points on the lane axis; pad to a multiple of TILE_N.
    coords_t = jnp.transpose(coords)                          # (3, N)
    n_pad = (-N) % TILE_N
    if n_pad:
        coords_t = jnp.pad(coords_t, ((0, 0), (0, n_pad)))
    n_tot = N + n_pad

    # Contraction-ready plane features: row index = c*H + i, col = j. Pure reshape.
    planes_r = planes_features.reshape(P, C * H, W)

    kernel = functools.partial(_triplane_kernel, H=H, W=W, C=C, proj_coefs=proj_coefs)
    out = pl.pallas_call(
        kernel,
        out_shape=jax.ShapeDtypeStruct((P * C, n_tot), jnp.float32),
        grid=(n_tot // TILE_N,),
        in_specs=[
            pl.BlockSpec((3, TILE_N), lambda t: (0, t)),          # point tile
            pl.BlockSpec((P, C * H, W), lambda t: (0, 0, 0)),     # planes resident in VMEM
        ],
        out_specs=pl.BlockSpec((P * C, TILE_N), lambda t: (0, t)),  # lane-dense output
        compiler_params=pltpu.CompilerParams(
            dimension_semantics=("parallel",),
        ),
    )(coords_t, planes_r)

    # (P*C, n_tot) -> (N, P*C)   (== sampled_vals.view(N, -1) in torch, p-major c-minor)
    return jnp.transpose(out)[:N]


def make_plane_axes():
    """create_subplanes_trivial_base(two_planes_per_axis=False) -> (3, 3, 2)."""
    e = jnp.eye(3, dtype=jnp.float32)
    up = jnp.stack([e[:, 0], e[:, 2]], axis=1)     # xz plane
    front = jnp.stack([e[:, 0], e[:, 1]], axis=1)  # xy plane
    right = jnp.stack([e[:, 1], e[:, 2]], axis=1)  # yz plane
    return jnp.stack([up, front, right], axis=0)


def reference_forward(coords, planes_features, plane_axes):
    """Pure-JAX gather-based reference (identical grid_sample semantics)."""
    N = coords.shape[0]
    P, C, H, W = planes_features.shape
    c = (coords * 2.0 - 1.0) * LBOUND / LBOUND
    proj = jnp.einsum("nd,pde->pne", c, plane_axes)        # (P, N, 2)
    gx, gy = proj[..., 0], proj[..., 1]
    ix = jnp.clip((gx + 1.0) * 0.5 * (W - 1), 0.0, W - 1.0)
    iy = jnp.clip((gy + 1.0) * 0.5 * (H - 1), 0.0, H - 1.0)
    x0 = jnp.floor(ix).astype(jnp.int32)
    y0 = jnp.floor(iy).astype(jnp.int32)
    fx = ix - x0.astype(jnp.float32)
    fy = iy - y0.astype(jnp.float32)
    x1 = jnp.minimum(x0 + 1, W - 1)
    y1 = jnp.minimum(y0 + 1, H - 1)
    outs = []
    for p in range(P):
        f = planes_features[p]                              # (C, H, W)
        v00 = f[:, y0[p], x0[p]]
        v01 = f[:, y0[p], x1[p]]
        v10 = f[:, y1[p], x0[p]]
        v11 = f[:, y1[p], x1[p]]
        v = (v00 * (1 - fx[p]) * (1 - fy[p]) + v01 * fx[p] * (1 - fy[p])
             + v10 * (1 - fx[p]) * fy[p] + v11 * fx[p] * fy[p])  # (C, N)
        outs.append(v.T)                                    # (N, C)
    return jnp.stack(outs, axis=1).reshape(N, P * C)


if __name__ == "__main__":
    key = jax.random.PRNGKey(0)
    k_planes, k_coords = jax.random.split(key)

    # deterministic "parameters": planes_features ~ init_sigma * N(0, 1)
    planes_features = INIT_SIGMA * jax.random.normal(
        k_planes, (NUM_PLANES, NUM_FEATURES, PLANE_RES, PLANE_RES), dtype=jnp.float32
    )
    plane_axes = make_plane_axes()                          # (3, 3, 2) buffer

    # input coordinates in the unit cube (input_pts_in_unit_cube=True)
    coords = jax.random.uniform(k_coords, (N_POINTS, 3), dtype=jnp.float32)

    out = jax.block_until_ready(triplane_forward(coords, planes_features, plane_axes))
    ref = jax.block_until_ready(reference_forward(coords, planes_features, plane_axes))

    assert out.shape == (N_POINTS, NUM_PLANES * NUM_FEATURES)
    np.testing.assert_allclose(np.asarray(out), np.asarray(ref), atol=1e-5, rtol=1e-5)

    print("KERNEL_OK")
</pallas_src>

<mosaic_0001>
module attributes {stable_mosaic.version = 11 : i64} {
  func.func @_triplane_kernel(%arg0: i32, %arg1: memref<3x128xf32, #tpu.memory_space<vmem>>, %arg2: memref<3x64x16xf32, #tpu.memory_space<vmem>>, %arg3: memref<12x128xf32, #tpu.memory_space<vmem>>) attributes {dimension_semantics = [#tpu.dimension_semantics<parallel>], iteration_bounds = array<i64: 1>, scalar_prefetch = 0 : i64, scratch_operands = 0 : i64, tpu.core_type = #tpu.core_type<tc>, window_params = [{transform_indices = @transform_0, window_bounds = array<i64: 3, 128>}, {pipeline_mode = #tpu.pipeline_mode<synchronous>, transform_indices = @transform_1, window_bounds = array<i64: 3, 64, 16>}, {transform_indices = @transform_2, window_bounds = array<i64: 12, 128>}]} {
    %c0 = arith.constant 0 : index
    %c0_0 = arith.constant 0 : index
    %0 = vector.load %arg1[%c0, %c0_0] : memref<3x128xf32, #tpu.memory_space<vmem>>, vector<3x128xf32>
    %cst = arith.constant 2.000000e+00 : f32
    %1 = vector.broadcast %cst : f32 to vector<3x128xf32>
    %2 = arith.mulf %0, %1 : vector<3x128xf32>
    %cst_1 = arith.constant 1.000000e+00 : f32
    %3 = vector.broadcast %cst_1 : f32 to vector<3x128xf32>
    %4 = arith.subf %2, %3 : vector<3x128xf32>
    %5 = tpu.iota {dimensions = array<i32: 0>} : vector<16x128xi32>
    %6 = tpu.iota {dimensions = array<i32: 0>} : vector<16x128xi32>
    %7 = vector.extract_strided_slice %4 {offsets = [0, 0], sizes = [1, 128], strides = [1, 1]} : vector<3x128xf32> to vector<1x128xf32>
    %8 = vector.extract_strided_slice %4 {offsets = [2, 0], sizes = [1, 128], strides = [1, 1]} : vector<3x128xf32> to vector<1x128xf32>
    %cst_2 = arith.constant 1.000000e+00 : f32
    %9 = vector.broadcast %cst_2 : f32 to vector<1x128xf32>
    %10 = arith.addf %7, %9 : vector<1x128xf32>
    %cst_3 = arith.constant 5.000000e-01 : f32
    %11 = vector.broadcast %cst_3 : f32 to vector<1x128xf32>
    %12 = arith.mulf %10, %11 : vector<1x128xf32>
    %cst_4 = arith.constant 1.500000e+01 : f32
    %13 = vector.broadcast %cst_4 : f32 to vector<1x128xf32>
    %14 = arith.mulf %12, %13 : vector<1x128xf32>
    %cst_5 = arith.constant 0.000000e+00 : f32
    %cst_6 = arith.constant 1.500000e+01 : f32
    %15 = vector.broadcast %cst_5 : f32 to vector<1x128xf32>
    %16 = arith.maximumf %15, %14 : vector<1x128xf32>
    %17 = vector.broadcast %cst_6 : f32 to vector<1x128xf32>
    %18 = arith.minimumf %17, %16 : vector<1x128xf32>
    %cst_7 = arith.constant 1.000000e+00 : f32
    %19 = vector.broadcast %cst_7 : f32 to vector<1x128xf32>
    %20 = arith.addf %8, %19 : vector<1x128xf32>
    %cst_8 = arith.constant 5.000000e-01 : f32
    %21 = vector.broadcast %cst_8 : f32 to vector<1x128xf32>
    %22 = arith.mulf %20, %21 : vector<1x128xf32>
    %cst_9 = arith.constant 1.500000e+01 : f32
    %23 = vector.broadcast %cst_9 : f32 to vector<1x128xf32>
    %24 = arith.mulf %22, %23 : vector<1x128xf32>
    %cst_10 = arith.constant 0.000000e+00 : f32
    %cst_11 = arith.constant 1.500000e+01 : f32
    %25 = vector.broadcast %cst_10 : f32 to vector<1x128xf32>
    %26 = arith.maximumf %25, %24 : vector<1x128xf32>
    %27 = vector.broadcast %cst_11 : f32 to vector<1x128xf32>
    %28 = arith.minimumf %27, %26 : vector<1x128xf32>
    %29 = math.floor %18 : vector<1x128xf32>
    %30 = math.floor %28 : vector<1x128xf32>
    %31 = arith.subf %18, %29 : vector<1x128xf32>
    %32 = arith.subf %28, %30 : vector<1x128xf32>
    %33 = arith.fptosi %29 : vector<1x128xf32> to vector<1x128xi32>
    %34 = arith.fptosi %30 : vector<1x128xf32> to vector<1x128xi32>
    %c1_i32 = arith.constant 1 : i32
    %35 = vector.broadcast %c1_i32 : i32 to vector<1x128xi32>
    %36 = arith.addi %33, %35 : vector<1x128xi32>
    %c15_i32 = arith.constant 15 : i32
    %37 = vector.broadcast %c15_i32 : i32 to vector<1x128xi32>
    %38 = arith.minsi %36, %37 : vector<1x128xi32>
    %c1_i32_12 = arith.constant 1 : i32
    %39 = vector.broadcast %c1_i32_12 : i32 to vector<1x128xi32>
    %40 = arith.addi %34, %39 : vector<1x128xi32>
    %c15_i32_13 = arith.constant 15 : i32
    %41 = vector.broadcast %c15_i32_13 : i32 to vector<1x128xi32>
    %42 = arith.minsi %40, %41 : vector<1x128xi32>
    %43 = vector.broadcast %33 : vector<1x128xi32> to vector<16x128xi32>
    %44 = arith.cmpi eq, %6, %43 : vector<16x128xi32>
    %cst_14 = arith.constant 1.000000e+00 : f32
    %45 = vector.broadcast %cst_14 : f32 to vector<1x128xf32>
    %46 = arith.subf %45, %31 : vector<1x128xf32>
    %cst_15 = arith.constant 0.000000e+00 : f32
    %47 = vector.shape_cast %46 : vector<1x128xf32> to vector<1x128xf32>
    %48 = vector.broadcast %47 : vector<1x128xf32> to vector<16x128xf32>
    %49 = vector.broadcast %cst_15 : f32 to vector<16x128xf32>
    %50 = arith.select %44, %48, %49 : vector<16x128xi1>, vector<16x128xf32>
    %51 = vector.broadcast %38 : vector<1x128xi32> to vector<16x128xi32>
    %52 = arith.cmpi eq, %6, %51 : vector<16x128xi32>
    %cst_16 = arith.constant 0.000000e+00 : f32
    %53 = vector.shape_cast %31 : vector<1x128xf32> to vector<1x128xf32>
    %54 = vector.broadcast %53 : vector<1x128xf32> to vector<16x128xf32>
    %55 = vector.broadcast %cst_16 : f32 to vector<16x128xf32>
    %56 = arith.select %52, %54, %55 : vector<16x128xi1>, vector<16x128xf32>
    %57 = arith.addf %50, %56 : vector<16x128xf32>
    %58 = vector.broadcast %34 : vector<1x128xi32> to vector<16x128xi32>
    %59 = arith.cmpi eq, %5, %58 : vector<16x128xi32>
    %cst_17 = arith.constant 1.000000e+00 : f32
    %60 = vector.broadcast %cst_17 : f32 to vector<1x128xf32>
    %61 = arith.subf %60, %32 : vector<1x128xf32>
    %cst_18 = arith.constant 0.000000e+00 : f32
    %62 = vector.shape_cast %61 : vector<1x128xf32> to vector<1x128xf32>
    %63 = vector.broadcast %62 : vector<1x128xf32> to vector<16x128xf32>
    %64 = vector.broadcast %cst_18 : f32 to vector<16x128xf32>
    %65 = arith.select %59, %63, %64 : vector<16x128xi1>, vector<16x128xf32>
    %66 = vector.broadcast %42 : vector<1x128xi32> to vector<16x128xi32>
    %67 = arith.cmpi eq, %5, %66 : vector<16x128xi32>
    %cst_19 = arith.constant 0.000000e+00 : f32
    %68 = vector.shape_cast %32 : vector<1x128xf32> to vector<1x128xf32>
    %69 = vector.broadcast %68 : vector<1x128xf32> to vector<16x128xf32>
    %70 = vector.broadcast %cst_19 : f32 to vector<16x128xf32>
    %71 = arith.select %67, %69, %70 : vector<16x128xi1>, vector<16x128xf32>
    %72 = arith.addf %65, %71 : vector<16x128xf32>
    %c0_20 = arith.constant 0 : index
    %c0_21 = arith.constant 0 : index
    %c0_22 = arith.constant 0 : index
    %73 = vector.load %arg2[%c0_20, %c0_21, %c0_22] : memref<3x64x16xf32, #tpu.memory_space<vmem>>, vector<1x64x16xf32>
    %74 = vector.shape_cast %73 : vector<1x64x16xf32> to vector<64x16xf32>
    %cst_23 = arith.constant dense<0.000000e+00> : vector<64x128xf32>
    %75 = tpu.matmul %74, %57, %cst_23 {dimension_numbers = #tpu.dot_dimension_numbers<[1], [0], [0], [1], [0, 0, 1, 1], [], []>} : vector<64x16xf32>, vector<16x128xf32>, vector<64x128xf32> -> vector<64x128xf32>
    %76 = vector.shape_cast %75 : vector<64x128xf32> to vector<4x16x128xf32>
    %77 = vector.shape_cast %72 : vector<16x128xf32> to vector<1x16x128xf32>
    %78 = vector.broadcast %77 : vector<1x16x128xf32> to vector<4x16x128xf32>
    %79 = arith.mulf %76, %78 : vector<4x16x128xf32>
    %cst_24 = arith.constant dense<0.000000e+00> : vector<4x128xf32>
    %80 = vector.multi_reduction <add>, %79, %cst_24 [1] : vector<4x16x128xf32> to vector<4x128xf32>
    %81 = vector.extract_strided_slice %4 {offsets = [0, 0], sizes = [1, 128], strides = [1, 1]} : vector<3x128xf32> to vector<1x128xf32>
    %82 = vector.extract_strided_slice %4 {offsets = [1, 0], sizes = [1, 128], strides = [1, 1]} : vector<3x128xf32> to vector<1x128xf32>
    %cst_25 = arith.constant 1.000000e+00 : f32
    %83 = vector.broadcast %cst_25 : f32 to vector<1x128xf32>
    %84 = arith.addf %81, %83 : vector<1x128xf32>
    %cst_26 = arith.constant 5.000000e-01 : f32
    %85 = vector.broadcast %cst_26 : f32 to vector<1x128xf32>
    %86 = arith.mulf %84, %85 : vector<1x128xf32>
    %cst_27 = arith.constant 1.500000e+01 : f32
    %87 = vector.broadcast %cst_27 : f32 to vector<1x128xf32>
    %88 = arith.mulf %86, %87 : vector<1x128xf32>
    %cst_28 = arith.constant 0.000000e+00 : f32
    %cst_29 = arith.constant 1.500000e+01 : f32
    %89 = vector.broadcast %cst_28 : f32 to vector<1x128xf32>
    %90 = arith.maximumf %89, %88 : vector<1x128xf32>
    %91 = vector.broadcast %cst_29 : f32 to vector<1x128xf32>
    %92 = arith.minimumf %91, %90 : vector<1x128xf32>
    %cst_30 = arith.constant 1.000000e+00 : f32
    %93 = vector.broadcast %cst_30 : f32 to vector<1x128xf32>
    %94 = arith.addf %82, %93 : vector<1x128xf32>
    %cst_31 = arith.constant 5.000000e-01 : f32
    %95 = vector.broadcast %cst_31 : f32 to vector<1x128xf32>
    %96 = arith.mulf %94, %95 : vector<1x128xf32>
    %cst_32 = arith.constant 1.500000e+01 : f32
    %97 = vector.broadcast %cst_32 : f32 to vector<1x128xf32>
    %98 = arith.mulf %96, %97 : vector<1x128xf32>
    %cst_33 = arith.constant 0.000000e+00 : f32
    %cst_34 = arith.constant 1.500000e+01 : f32
    %99 = vector.broadcast %cst_33 : f32 to vector<1x128xf32>
    %100 = arith.maximumf %99, %98 : vector<1x128xf32>
    %101 = vector.broadcast %cst_34 : f32 to vector<1x128xf32>
    %102 = arith.minimumf %101, %100 : vector<1x128xf32>
    %103 = math.floor %92 : vector<1x128xf32>
    %104 = math.floor %102 : vector<1x128xf32>
    %105 = arith.subf %92, %103 : vector<1x128xf32>
    %106 = arith.subf %102, %104 : vector<1x128xf32>
    %107 = arith.fptosi %103 : vector<1x128xf32> to vector<1x128xi32>
    %108 = arith.fptosi %104 : vector<1x128xf32> to vector<1x128xi32>
    %c1_i32_35 = arith.constant 1 : i32
    %109 = vector.broadcast %c1_i32_35 : i32 to vector<1x128xi32>
    %110 = arith.addi %107, %109 : vector<1x128xi32>
    %c15_i32_36 = arith.constant 15 : i32
    %111 = vector.broadcast %c15_i32_36 : i32 to vector<1x128xi32>
    %112 = arith.minsi %110, %111 : vector<1x128xi32>
    %c1_i32_37 = arith.constant 1 : i32
    %113 = vector.broadcast %c1_i32_37 : i32 to vector<1x128xi32>
    %114 = arith.addi %108, %113 : vector<1x128xi32>
    %c15_i32_38 = arith.constant 15 : i32
    %115 = vector.broadcast %c15_i32_38 : i32 to vector<1x128xi32>
    %116 = arith.minsi %114, %115 : vector<1x128xi32>
    %117 = vector.broadcast %107 : vector<1x128xi32> to vector<16x128xi32>
    %118 = arith.cmpi eq, %6, %117 : vector<16x128xi32>
    %cst_39 = arith.constant 1.000000e+00 : f32
    %119 = vector.broadcast %cst_39 : f32 to vector<1x128xf32>
    %120 = arith.subf %119, %105 : vector<1x128xf32>
    %cst_40 = arith.constant 0.000000e+00 : f32
    %121 = vector.shape_cast %120 : vector<1x128xf32> to vector<1x128xf32>
    %122 = vector.broadcast %121 : vector<1x128xf32> to vector<16x128xf32>
    %123 = vector.broadcast %cst_40 : f32 to vector<16x128xf32>
    %124 = arith.select %118, %122, %123 : vector<16x128xi1>, vector<16x128xf32>
    %125 = vector.broadcast %112 : vector<1x128xi32> to vector<16x128xi32>
    %126 = arith.cmpi eq, %6, %125 : vector<16x128xi32>
    %cst_41 = arith.constant 0.000000e+00 : f32
    %127 = vector.shape_cast %105 : vector<1x128xf32> to vector<1x128xf32>
    %128 = vector.broadcast %127 : vector<1x128xf32> to vector<16x128xf32>
    %129 = vector.broadcast %cst_41 : f32 to vector<16x128xf32>
    %130 = arith.select %126, %128, %129 : vector<16x128xi1>, vector<16x128xf32>
    %131 = arith.addf %124, %130 : vector<16x128xf32>
    %132 = vector.broadcast %108 : vector<1x128xi32> to vector<16x128xi32>
    %133 = arith.cmpi eq, %5, %132 : vector<16x128xi32>
    %cst_42 = arith.constant 1.000000e+00 : f32
    %134 = vector.broadcast %cst_42 : f32 to vector<1x128xf32>
    %135 = arith.subf %134, %106 : vector<1x128xf32>
    %cst_43 = arith.constant 0.000000e+00 : f32
    %136 = vector.shape_cast %135 : vector<1x128xf32> to vector<1x128xf32>
    %137 = vector.broadcast %136 : vector<1x128xf32> to vector<16x128xf32>
    %138 = vector.broadcast %cst_43 : f32 to vector<16x128xf32>
    %139 = arith.select %133, %137, %138 : vector<16x128xi1>, vector<16x128xf32>
    %140 = vector.broadcast %116 : vector<1x128xi32> to vector<16x128xi32>
    %141 = arith.cmpi eq, %5, %140 : vector<16x128xi32>
    %cst_44 = arith.constant 0.000000e+00 : f32
    %142 = vector.shape_cast %106 : vector<1x128xf32> to vector<1x128xf32>
    %143 = vector.broadcast %142 : vector<1x128xf32> to vector<16x128xf32>
    %144 = vector.broadcast %cst_44 : f32 to vector<16x128xf32>
    %145 = arith.select %141, %143, %144 : vector<16x128xi1>, vector<16x128xf32>
    %146 = arith.addf %139, %145 : vector<16x128xf32>
    %c1 = arith.constant 1 : index
    %c0_45 = arith.constant 0 : index
    %c0_46 = arith.constant 0 : index
    %147 = vector.load %arg2[%c1, %c0_45, %c0_46] : memref<3x64x16xf32, #tpu.memory_space<vmem>>, vector<1x64x16xf32>
    %148 = vector.shape_cast %147 : vector<1x64x16xf32> to vector<64x16xf32>
    %cst_47 = arith.constant dense<0.000000e+00> : vector<64x128xf32>
    %149 = tpu.matmul %148, %131, %cst_47 {dimension_numbers = #tpu.dot_dimension_numbers<[1], [0], [0], [1], [0, 0, 1, 1], [], []>} : vector<64x16xf32>, vector<16x128xf32>, vector<64x128xf32> -> vector<64x128xf32>
    %150 = vector.shape_cast %149 : vector<64x128xf32> to vector<4x16x128xf32>
    %151 = vector.shape_cast %146 : vector<16x128xf32> to vector<1x16x128xf32>
    %152 = vector.broadcast %151 : vector<1x16x128xf32> to vector<4x16x128xf32>
    %153 = arith.mulf %150, %152 : vector<4x16x128xf32>
    %cst_48 = arith.constant dense<0.000000e+00> : vector<4x128xf32>
    %154 = vector.multi_reduction <add>, %153, %cst_48 [1] : vector<4x16x128xf32> to vector<4x128xf32>
    %155 = vector.extract_strided_slice %4 {offsets = [1, 0], sizes = [1, 128], strides = [1, 1]} : vector<3x128xf32> to vector<1x128xf32>
    %156 = vector.extract_strided_slice %4 {offsets = [2, 0], sizes = [1, 128], strides = [1, 1]} : vector<3x128xf32> to vector<1x128xf32>
    %cst_49 = arith.constant 1.000000e+00 : f32
    %157 = vector.broadcast %cst_49 : f32 to vector<1x128xf32>
    %158 = arith.addf %155, %157 : vector<1x128xf32>
    %cst_50 = arith.constant 5.000000e-01 : f32
    %159 = vector.broadcast %cst_50 : f32 to vector<1x128xf32>
    %160 = arith.mulf %158, %159 : vector<1x128xf32>
    %cst_51 = arith.constant 1.500000e+01 : f32
    %161 = vector.broadcast %cst_51 : f32 to vector<1x128xf32>
    %162 = arith.mulf %160, %161 : vector<1x128xf32>
    %cst_52 = arith.constant 0.000000e+00 : f32
    %cst_53 = arith.constant 1.500000e+01 : f32
    %163 = vector.broadcast %cst_52 : f32 to vector<1x128xf32>
    %164 = arith.maximumf %163, %162 : vector<1x128xf32>
    %165 = vector.broadcast %cst_53 : f32 to vector<1x128xf32>
    %166 = arith.minimumf %165, %164 : vector<1x128xf32>
    %cst_54 = arith.constant 1.000000e+00 : f32
    %167 = vector.broadcast %cst_54 : f32 to vector<1x128xf32>
    %168 = arith.addf %156, %167 : vector<1x128xf32>
    %cst_55 = arith.constant 5.000000e-01 : f32
    %169 = vector.broadcast %cst_55 : f32 to vector<1x128xf32>
    %170 = arith.mulf %168, %169 : vector<1x128xf32>
    %cst_56 = arith.constant 1.500000e+01 : f32
    %171 = vector.broadcast %cst_56 : f32 to vector<1x128xf32>
    %172 = arith.mulf %170, %171 : vector<1x128xf32>
    %cst_57 = arith.constant 0.000000e+00 : f32
    %cst_58 = arith.constant 1.500000e+01 : f32
    %173 = vector.broadcast %cst_57 : f32 to vector<1x128xf32>
    %174 = arith.maximumf %173, %172 : vector<1x128xf32>
    %175 = vector.broadcast %cst_58 : f32 to vector<1x128xf32>
    %176 = arith.minimumf %175, %174 : vector<1x128xf32>
    %177 = math.floor %166 : vector<1x128xf32>
    %178 = math.floor %176 : vector<1x128xf32>
    %179 = arith.subf %166, %177 : vector<1x128xf32>
    %180 = arith.subf %176, %178 : vector<1x128xf32>
    %181 = arith.fptosi %177 : vector<1x128xf32> to vector<1x128xi32>
    %182 = arith.fptosi %178 : vector<1x128xf32> to vector<1x128xi32>
    %c1_i32_59 = arith.constant 1 : i32
    %183 = vector.broadcast %c1_i32_59 : i32 to vector<1x128xi32>
    %184 = arith.addi %181, %183 : vector<1x128xi32>
    %c15_i32_60 = arith.constant 15 : i32
    %185 = vector.broadcast %c15_i32_60 : i32 to vector<1x128xi32>
    %186 = arith.minsi %184, %185 : vector<1x128xi32>
    %c1_i32_61 = arith.constant 1 : i32
    %187 = vector.broadcast %c1_i32_61 : i32 to vector<1x128xi32>
    %188 = arith.addi %182, %187 : vector<1x128xi32>
    %c15_i32_62 = arith.constant 15 : i32
    %189 = vector.broadcast %c15_i32_62 : i32 to vector<1x128xi32>
    %190 = arith.minsi %188, %189 : vector<1x128xi32>
    %191 = vector.broadcast %181 : vector<1x128xi32> to vector<16x128xi32>
    %192 = arith.cmpi eq, %6, %191 : vector<16x128xi32>
    %cst_63 = arith.constant 1.000000e+00 : f32
    %193 = vector.broadcast %cst_63 : f32 to vector<1x128xf32>
    %194 = arith.subf %193, %179 : vector<1x128xf32>
    %cst_64 = arith.constant 0.000000e+00 : f32
    %195 = vector.shape_cast %194 : vector<1x128xf32> to vector<1x128xf32>
    %196 = vector.broadcast %195 : vector<1x128xf32> to vector<16x128xf32>
    %197 = vector.broadcast %cst_64 : f32 to vector<16x128xf32>
    %198 = arith.select %192, %196, %197 : vector<16x128xi1>, vector<16x128xf32>
    %199 = vector.broadcast %186 : vector<1x128xi32> to vector<16x128xi32>
    %200 = arith.cmpi eq, %6, %199 : vector<16x128xi32>
    %cst_65 = arith.constant 0.000000e+00 : f32
    %201 = vector.shape_cast %179 : vector<1x128xf32> to vector<1x128xf32>
    %202 = vector.broadcast %201 : vector<1x128xf32> to vector<16x128xf32>
    %203 = vector.broadcast %cst_65 : f32 to vector<16x128xf32>
    %204 = arith.select %200, %202, %203 : vector<16x128xi1>, vector<16x128xf32>
    %205 = arith.addf %198, %204 : vector<16x128xf32>
    %206 = vector.broadcast %182 : vector<1x128xi32> to vector<16x128xi32>
    %207 = arith.cmpi eq, %5, %206 : vector<16x128xi32>
    %cst_66 = arith.constant 1.000000e+00 : f32
    %208 = vector.broadcast %cst_66 : f32 to vector<1x128xf32>
    %209 = arith.subf %208, %180 : vector<1x128xf32>
    %cst_67 = arith.constant 0.000000e+00 : f32
    %210 = vector.shape_cast %209 : vector<1x128xf32> to vector<1x128xf32>
    %211 = vector.broadcast %210 : vector<1x128xf32> to vector<16x128xf32>
    %212 = vector.broadcast %cst_67 : f32 to vector<16x128xf32>
    %213 = arith.select %207, %211, %212 : vector<16x128xi1>, vector<16x128xf32>
    %214 = vector.broadcast %190 : vector<1x128xi32> to vector<16x128xi32>
    %215 = arith.cmpi eq, %5, %214 : vector<16x128xi32>
    %cst_68 = arith.constant 0.000000e+00 : f32
    %216 = vector.shape_cast %180 : vector<1x128xf32> to vector<1x128xf32>
    %217 = vector.broadcast %216 : vector<1x128xf32> to vector<16x128xf32>
    %218 = vector.broadcast %cst_68 : f32 to vector<16x128xf32>
    %219 = arith.select %215, %217, %218 : vector<16x128xi1>, vector<16x128xf32>
    %220 = arith.addf %213, %219 : vector<16x128xf32>
    %c2 = arith.constant 2 : index
    %c0_69 = arith.constant 0 : index
    %c0_70 = arith.constant 0 : index
    %221 = vector.load %arg2[%c2, %c0_69, %c0_70] : memref<3x64x16xf32, #tpu.memory_space<vmem>>, vector<1x64x16xf32>
    %222 = vector.shape_cast %221 : vector<1x64x16xf32> to vector<64x16xf32>
    %cst_71 = arith.constant dense<0.000000e+00> : vector<64x128xf32>
    %223 = tpu.matmul %222, %205, %cst_71 {dimension_numbers = #tpu.dot_dimension_numbers<[1], [0], [0], [1], [0, 0, 1, 1], [], []>} : vector<64x16xf32>, vector<16x128xf32>, vector<64x128xf32> -> vector<64x128xf32>
    %224 = vector.shape_cast %223 : vector<64x128xf32> to vector<4x16x128xf32>
    %225 = vector.shape_cast %220 : vector<16x128xf32> to vector<1x16x128xf32>
    %226 = vector.broadcast %225 : vector<1x16x128xf32> to vector<4x16x128xf32>
    %227 = arith.mulf %224, %226 : vector<4x16x128xf32>
    %cst_72 = arith.constant dense<0.000000e+00> : vector<4x128xf32>
    %228 = vector.multi_reduction <add>, %227, %cst_72 [1] : vector<4x16x128xf32> to vector<4x128xf32>
    %229 = tpu.concatenate %80, %154, %228 in 0 : vector<4x128xf32>, vector<4x128xf32>, vector<4x128xf32> -> vector<12x128xf32>
    %c0_73 = arith.constant 0 : index
    %c0_74 = arith.constant 0 : index
    %230 = vector.load %arg3[%c0_73, %c0_74] : memref<12x128xf32, #tpu.memory_space<vmem>>, vector<12x128xf32>
    tpu.vector_store %arg3[%c0_73, %c0_74], %229 {strides = array<i32>} : memref<12x128xf32, #tpu.memory_space<vmem>>, vector<12x128xf32>,
    return
  }
  func.func @transform_0(%arg0: i32) -> (i32, i32) {
    %c0_i32 = arith.constant 0 : i32
    %c0_i32_0 = arith.constant 0 : i32
    return %c0_i32, %arg0 : i32, i32
  }
  func.func @transform_1(%arg0: i32) -> (i32, i32, i32) {
    %c0_i32 = arith.constant 0 : i32
    %c0_i32_0 = arith.constant 0 : i32
    %c0_i32_1 = arith.constant 0 : i32
    %c0_i32_2 = arith.constant 0 : i32
    return %c0_i32, %c0_i32_0, %c0_i32_1 : i32, i32, i32
  }
  func.func @transform_2(%arg0: i32) -> (i32, i32) {
    %c0_i32 = arith.constant 0 : i32
    %c0_i32_0 = arith.constant 0 : i32
    return %c0_i32, %arg0 : i32, i32
  }
}

</mosaic_0001>

<bundles_post_ra>
// kernel: tpu_custom_call.1
= control target key start
LH: loop header
LB: loop body
LE: loop exit
PB: predicated region body
PF: predicated region fallthrough
CT: control target
= control target key end

     0   :  { %vm90_vm0 = vcmask 130048   ;;  %s1012_s0 = inlined_call_operand.vmem [shape: f32[3,128], index: 0, kind: input, shape index: {}]   ;;  %s1013_s1 = inlined_call_operand.vmem [shape: f32[3,64,16], index: 1, kind: input, shape index: {}]   ;;  %s1014_s2 = inlined_call_operand.hbm [shape: f32[12,128], index: 2, kind: output, shape index: {}]  }
   0x1   :  { %v12_v0 = vld [vmem:[%s1012_s0] sm:$0x7] }
   0x2   :  { %v82_v1 = vld [vmem:[%s1013_s1] sm:$0xff]  ;;  %v13_v3 = vmul.f32 2.0, %v12_v0 }
   0x3   :  { %v86_v2 = vld [vmem:[%s1013_s1 + $0x20] sm:$0xff]  ;;  %755 = vmatprep.mubr.msk.f32.mxu0 %vm90_vm0, %v82_v1 }
   0x4   :  { %761 = vmatprep.mubr.msk.f32.mxu1 %vm90_vm0, %v86_v2  ;;  %v680_v4 = vadd.f32 -1.0, %v13_v3 }
   0x6   :  { %v18_v5 = vadd.f32 1.0, %v680_v4 }
   0x8   :  { %v19_v6 = vmul.f32 0.5, %v18_v5 }
   0x9   :  { %7 = vsyncpa [#allocation3], 0  ;;  %v15_v7 = vlaneseq  ;;  %v83_v54 = vld [vmem:[%s1013_s1 + $0x8] sm:$0xff]  ;;  %v84_v57 = vld [vmem:[%s1013_s1 + $0x10] sm:$0xff]  ;;  %vm634_vm14 = vcmask 1041409   ;;  %vm636_vm15 = vcmask 1042434  }
   0xa   :  { %v20_v8 = vmul.f32 15.0, %v19_v6  ;;  %v87_v55 = vld [vmem:[%s1013_s1 + $0x28] sm:$0xff]  ;;  %v88_v58 = vld [vmem:[%s1013_s1 + $0x30] sm:$0xff]  ;;  %v85_v59 = vld [vmem:[%s1013_s1 + $0x18] sm:$0xff] }
   0xb   :  { %v16_v10 = vshrl.u32 %v15_v7, 7  ;;  %v89_v60 = vld [vmem:[%s1013_s1 + $0x38] sm:$0xff]  ;;  %v689_v61 = vld [vmem:[%s1013_s1 + $0x40] sm:$0xff]  ;;  %v690_v63 = vld [vmem:[%s1013_s1 + $0x48] sm:$0xff] }
   0xc   :  { %v21_v9 = vmax.f32 %v20_v8, 0.0  ;;  %v705_v62 = vld [vmem:[%s1013_s1 + $0x80] sm:$0xff]  ;;  %v706_v0 = vld [vmem:[%s1013_s1 + $0x88] sm:$0xff]  ;;  %v691_v1 = vld [vmem:[%s1013_s1 + $0x50] sm:$0xff] }
   0xd   :  { %v58_v13 = vsub.s32 2, %v16_v10  ;;  %v31_v16 = vsub.s32 0, %v16_v10  ;;  %v258_v17 = vsub.s32 1, %v16_v10  ;;  %v17_v18 = vadd.s32 8, %v16_v10  ;;  %v707_v2 = vld [vmem:[%s1013_s1 + $0x90] sm:$0xff]  ;;  %v692_v3 = vld [vmem:[%s1013_s1 + $0x58] sm:$0xff] }
   0xe   :  { %v22_v11 = vmin.f32 %v21_v9, 15.0  ;;  %v708_v4 = vld [vmem:[%s1013_s1 + $0x98] sm:$0xff]  ;;  %v693_v5 = vld [vmem:[%s1013_s1 + $0x60] sm:$0xff]  ;;  %v694_v7 = vld [vmem:[%s1013_s1 + $0x68] sm:$0xff] }
   0xf   :  { %v709_v6 = vld [vmem:[%s1013_s1 + $0xa0] sm:$0xff]  ;;  %v710_v8 = vld [vmem:[%s1013_s1 + $0xa8] sm:$0xff]  ;;  %v695_v9 = vld [vmem:[%s1013_s1 + $0x70] sm:$0xff] }
  0x10   :  { %v23_v12 = vfloor.f32 %v22_v11 }
  0x12   :  { %v24_v14 = vsub.f32 %v22_v11, %v23_v12  ;;  %v813_v15 = vtrunc.f32 %v23_v12  ;;  %v696_v11 = vld [vmem:[%s1013_s1 + $0x78] sm:$0xff] }
  0x13   :  { %v712_v12 = vld [vmem:[%s1013_s1 + $0xb8] sm:$0xff] }
  0x14   :  { %v814_v19 = vcvt.f32.s32 %v813_v15  ;;  %v35_v20 = vsub.f32 1.0, %v24_v14  ;;  %v77_v21 = vrot.slane %v24_v14, %v58_v13  ;;  %v51_v26 = vrot.slane %v24_v14, %v31_v16 }
  0x15   :  { %v277_v29 = vrot.slane %v24_v14, %v258_v17 }
  0x16   :  { %v26_v22 = vadd.s32 1, %v814_v19  ;;  %v32_v23 = vrot.slane %v814_v19, %v31_v16  ;;  %v39_v24 = vrot.slane %v35_v20, %v31_v16  ;;  %v59_v25 = vrot.slane %v814_v19, %v58_v13 }
  0x17   :  { %v65_v27 = vrot.slane %v35_v20, %v58_v13  ;;  %v259_v28 = vrot.slane %v814_v19, %v258_v17  ;;  %v265_v32 = vrot.slane %v35_v20, %v258_v17 }
  0x18   :  { %vm27_vm1 = vcmp.lt.s32.totalorder %v26_v22, 15  ;;  %vm33_vm2 = vcmp.eq.s32.totalorder %v16_v10, %v32_v23  ;;  %vm34_vm3 = vcmp.eq.s32.totalorder %v17_v18, %v32_v23  ;;  %vm60_vm4 = vcmp.eq.s32.totalorder %v16_v10, %v59_v25 }
  0x19   :  { %v28_v30 = vsel %vm27_vm1, %v26_v22, 15  ;;  %v40_v31 = vsel %vm33_vm2, %v39_v24, 0.0  ;;  %vm61_vm5 = vcmp.eq.s32.totalorder %v17_v18, %v59_v25  ;;  %v66_v34 = vsel %vm60_vm4, %v65_v27, 0.0 }
  0x1a   :  { %v45_v33 = vrot.slane %v28_v30, %v31_v16  ;;  %v67_v35 = vsel %vm61_vm5, %v65_v27, 0.0  ;;  %v71_v36 = vrot.slane %v28_v30, %v58_v13  ;;  %v41_v37 = vsel %vm34_vm3, %v39_v24, 0.0 }
  0x1b   :  { %vm260_vm6 = vcmp.eq.s32.totalorder %v16_v10, %v259_v28  ;;  %vm261_vm7 = vcmp.eq.s32.totalorder %v17_v18, %v259_v28  ;;  %v271_v38 = vrot.slane %v28_v30, %v258_v17  ;;  %vm645_vm1 = vcmask 1045509  }
  0x1c   :  { %vm46_vm8 = vcmp.eq.s32.totalorder %v16_v10, %v45_v33  ;;  %vm47_vm9 = vcmp.eq.s32.totalorder %v17_v18, %v45_v33  ;;  %vm72_vm10 = vcmp.eq.s32.totalorder %v16_v10, %v71_v36  ;;  %vm73_vm11 = vcmp.eq.s32.totalorder %v17_v18, %v71_v36 }
  0x1d   :  { %v52_v39 = vsel %vm46_vm8, %v51_v26, 0.0  ;;  %v53_v40 = vsel %vm47_vm9, %v51_v26, 0.0  ;;  %v78_v41 = vsel %vm72_vm10, %v77_v21, 0.0  ;;  %v79_v42 = vsel %vm73_vm11, %v77_v21, 0.0 }
  0x1e   :  { %v54_v43 = vadd.f32 %v52_v39, %v40_v31  ;;  %v55_v44 = vadd.f32 %v53_v40, %v41_v37  ;;  %v871_v45 = vadd.f32 %v78_v41, %v66_v34  ;;  %v873_v46 = vadd.f32 %v79_v42, %v67_v35 }
  0x1f   :  { %v266_v47 = vsel %vm260_vm6, %v265_v32, 0.0  ;;  %v267_v48 = vsel %vm261_vm7, %v265_v32, 0.0  ;;  %vm272_vm12 = vcmp.eq.s32.totalorder %v16_v10, %v271_v38  ;;  %vm273_vm13 = vcmp.eq.s32.totalorder %v17_v18, %v271_v38  ;;  %v711_v10 = vld [vmem:[%s1013_s1 + $0xb0] sm:$0xff]  ;;  %s842_s1 = smov [#allocation2]  }
  0x20   :  { %v799_v49 = vpack.c.bf16 %v55_v44, %v54_v43  ;;  %v278_v50 = vsel %vm272_vm12, %v277_v29, 0.0  ;;  %v279_v51 = vsel %vm273_vm13, %v277_v29, 0.0  ;;  %vm647_vm2 = vcmask 1046534   ;;  %s669_s29 = sshll.u32 %s842_s1, 4  ;;  %s670_s29 = int_to_ptr.vmem [resolvable:$true] %s669_s29 }
  0x21   :  { %v875_v52 = vadd.f32 %v278_v50, %v266_v47  ;;  %v877_v53 = vadd.f32 %v279_v51, %v267_v48  ;;  %vm649_vm3 = vcmask 1047559   ;;  %vm660_vm4 = vcmask 1043456   ;;  %s818_s30 = scalar_lea.vmem %s670_s29, 256  ;;  %p823_p1 = scmp.lt.s32.totalorder %s670_s29, %s670_s29 }
  0x22   :  { %800 = vmatprep.subr.bf16.mxu0 %v799_v49  ;;  %811 = vmatprep.subr.bf16.mxu1 %v799_v49  ;;  %p819_p0 = scmp.ne.s32.totalorder %s670_s29, %s818_s30  ;;  %p824_p2 = scmp.lt.s32.totalorder %s818_s30, %s818_s30 }
  0x23   :  { %802 = vmatpush3.bf16.msra.mxu0 %v799_v49  ;;  %812 = vmatpush3.bf16.msra.mxu1 %v799_v49  ;;  %v807_v56 = vpack.c.bf16 %v877_v53, %v875_v52 }
  0x24   :  { %804 = vmatprep.subr.bf16.mxu1 %v799_v49  ;;  %p825_p3 = por %p824_p2, %p823_p1 }
  0x25   :  { %808 = vmatprep.subr.bf16.mxu0 %v807_v56 }
  0x26   :  { %756 = vmatmul.mubr.msk.f32.vlgmr.msra.gmra.mrb[0].mxu0 %vm90_vm0, %v83_v54  ;;  %762 = vmatmul.mubr.msk.f32.vlgmr.msra.gmra.mrb[0].mxu1 %vm90_vm0, %v87_v55  ;;  %p826_p4 = pnand %p825_p3, %p819_p0 }
  0x27   :  { %806 = vmatpush3.bf16.msra.mxu1 %v799_v49  ;;  %810 = vmatpush3.bf16.msra.mxu0 %v807_v56 }
  0x28   :  { %758 = vmatprep.mubr.msk.f32.mxu0 %vm90_vm0, %v84_v57  ;;  %764 = vmatprep.mubr.msk.f32.mxu1 %vm90_vm0, %v88_v58 }
  0x2a   :  { %759 = vmatmul.mubr.msk.f32.gmra.mrb[2].mxu0 %vm90_vm0, %v85_v59  ;;  %765 = vmatmul.mubr.msk.f32.gmra.mrb[2].mxu1 %vm90_vm0, %v89_v60 }
  0x2b   :  { %771 = vmatprep.mubr.msk.f32.mxu1 %vm90_vm0, %v689_v61  ;;  %787 = vmatprep.mubr.msk.f32.mxu0 %vm90_vm0, %v705_v62 }
  0x2e   :  { %772 = vmatmul.mubr.msk.f32.vlgmr.msra.gmra.mrb[4].mxu1 %vm90_vm0, %v690_v63  ;;  %788 = vmatmul.mubr.msk.f32.vlgmr.msra.gmra.mrb[4].mxu0 %vm90_vm0, %v706_v0 }
  0x2f   :  { %774 = vmatprep.mubr.msk.f32.mxu1 %vm90_vm0, %v691_v1  ;;  %790 = vmatprep.mubr.msk.f32.mxu0 %vm90_vm0, %v707_v2 }
  0x32   :  { %775 = vmatmul.mubr.msk.f32.gmra.mrb[6].mxu1 %vm90_vm0, %v692_v3  ;;  %791 = vmatmul.mubr.msk.f32.gmra.mrb[6].mxu0 %vm90_vm0, %v708_v4 }
  0x33   :  { %777 = vmatprep.mubr.msk.f32.mxu1 %vm90_vm0, %v693_v5  ;;  %793 = vmatprep.mubr.msk.f32.mxu0 %vm90_vm0, %v709_v6 }
  0x36   :  { %778 = vmatmul.mubr.msk.f32.gmra.mrb[8].mxu1 %vm90_vm0, %v694_v7  ;;  %794 = vmatmul.mubr.msk.f32.gmra.mrb[8].mxu0 %vm90_vm0, %v710_v8 }
  0x37   :  { %780 = vmatprep.mubr.msk.f32.mxu1 %vm90_vm0, %v695_v9  ;;  %796 = vmatprep.mubr.msk.f32.mxu0 %vm90_vm0, %v711_v10 }
  0x3a   :  { %781 = vmatmul.mubr.msk.f32.gmra.mrb[10].mxu1 %vm90_vm0, %v696_v11  ;;  %797 = vmatmul.mubr.msk.f32.gmra.mrb[10].mxu0 %vm90_vm0, %v712_v12  ;;  %vm638_vm0 = vcmask 1043459  }
  0xf9   :  { %v757_v13 = vpop.f32.mrb[0].mxu0  ;;  %v763_v14 = vpop.f32.mrb[0].mxu1 }
  0xfa   :  { %v221_v15 = vmul.f32 %v757_v13, %v873_v46  ;;  %v225_v16 = vmul.f32 %v763_v14, %v873_v46  ;;  %v181_v17 = vpop.f32.mrb[1].mxu0  ;;  %v201_v18 = vpop.f32.mrb[1].mxu1 }
  0xfb   :  { %v220_v19 = vmul.f32 %v181_v17, %v871_v45  ;;  %v224_v20 = vmul.f32 %v201_v18, %v871_v45 }
  0xfd   :  { %v228_v21 = vadd.f32 %v221_v15, %v220_v19  ;;  %v242_v22 = vadd.f32 %v225_v16, %v224_v20  ;;  %v760_v23 = vpop.f32.mrb[2].mxu0  ;;  %v766_v24 = vpop.f32.mrb[2].mxu1 }
  0xfe   :  { %v223_v25 = vmul.f32 %v760_v23, %v873_v46  ;;  %v227_v26 = vmul.f32 %v766_v24, %v873_v46  ;;  %v191_v27 = vpop.f32.mrb[3].mxu0  ;;  %v211_v28 = vpop.f32.mrb[3].mxu1 }
  0xff   :  { %v229_v29 = vrot.slane %v228_v21, 4  ;;  %v243_v30 = vrot.slane %v242_v22, 4  ;;  %v222_v31 = vmul.f32 %v191_v27, %v871_v45  ;;  %v226_v32 = vmul.f32 %v211_v28, %v871_v45 }
 0x101   :  { %v230_v33 = vadd.f32 %v229_v29, %v228_v21  ;;  %v244_v34 = vadd.f32 %v243_v30, %v242_v22  ;;  %v235_v35 = vadd.f32 %v223_v25, %v222_v31  ;;  %v249_v36 = vadd.f32 %v227_v26, %v226_v32  ;;  %v773_v37 = vpop.f32.mrb[4].mxu1  ;;  %v789_v38 = vpop.f32.mrb[4].mxu0 }
 0x102   :  { %v421_v39 = vmul.f32 %v773_v37, %v877_v53  ;;  %v595_v40 = vmul.f32 %v789_v38, %v873_v46  ;;  %v381_v41 = vpop.f32.mrb[5].mxu1  ;;  %v555_v42 = vpop.f32.mrb[5].mxu0 }
 0x103   :  { %v231_v43 = vrot.slane %v230_v33, 2  ;;  %v245_v44 = vrot.slane %v244_v34, 2  ;;  %v236_v47 = vrot.slane %v235_v35, 4  ;;  %v250_v48 = vrot.slane %v249_v36, 4 }
 0x104   :  { %v420_v49 = vmul.f32 %v381_v41, %v875_v52  ;;  %v594_v50 = vmul.f32 %v555_v42, %v871_v45 }
 0x105   :  { %v232_v51 = vadd.f32 %v231_v43, %v230_v33  ;;  %v246_v54 = vadd.f32 %v245_v44, %v244_v34  ;;  %v237_v55 = vadd.f32 %v236_v47, %v235_v35  ;;  %v251_v56 = vadd.f32 %v250_v48, %v249_v36  ;;  %v776_v57 = vpop.f32.mrb[6].mxu1  ;;  %v792_v58 = vpop.f32.mrb[6].mxu0 }
 0x106   :  { %v428_v59 = vadd.f32 %v421_v39, %v420_v49  ;;  %v602_v60 = vadd.f32 %v595_v40, %v594_v50  ;;  %v423_v61 = vmul.f32 %v776_v57, %v877_v53  ;;  %v597_v62 = vmul.f32 %v792_v58, %v873_v46  ;;  %v391_v63 = vpop.f32.mrb[7].mxu1  ;;  %v565_v0 = vpop.f32.mrb[7].mxu0 }
 0x107   :  { %v233_v1 = vrot.slane %v232_v51, 1  ;;  %v238_v2 = vrot.slane %v237_v55, 2  ;;  %v252_v3 = vrot.slane %v251_v56, 2  ;;  %v422_v6 = vmul.f32 %v391_v63, %v875_v52 }
 0x108   :  { %v429_v4 = vrot.slane %v428_v59, 4  ;;  %v603_v5 = vrot.slane %v602_v60, 4  ;;  %v596_v7 = vmul.f32 %v565_v0, %v871_v45  ;;  %v247_v8 = vrot.slane %v246_v54, 1 }
 0x109   :  { %v239_v9 = vadd.f32 %v238_v2, %v237_v55  ;;  %v253_v10 = vadd.f32 %v252_v3, %v251_v56  ;;  %v779_v11 = vpop.f32.mrb[8].mxu1  ;;  %v795_v12 = vpop.f32.mrb[8].mxu0  ;;  %v435_v15 = vadd.f32 %v423_v61, %v422_v6  ;;  %v234_v19 = vadd.f32 %v233_v1, %v232_v51 }
 0x10a   :  { %v430_v13 = vadd.f32 %v429_v4, %v428_v59  ;;  %v604_v14 = vadd.f32 %v603_v5, %v602_v60  ;;  %v609_v16 = vadd.f32 %v597_v62, %v596_v7  ;;  %v401_v17 = vpop.f32.mrb[9].mxu1  ;;  %v575_v18 = vpop.f32.mrb[9].mxu0  ;;  %v425_v21 = vmul.f32 %v779_v11, %v877_v53 }
 0x10b   :  { %v240_v20 = vrot.slane %v239_v9, 1  ;;  %v599_v22 = vmul.f32 %v795_v12, %v873_v46  ;;  %v436_v25 = vrot.slane %v435_v15, 4  ;;  %v254_v28 = vrot.slane %v253_v10, 1 }
 0x10c   :  { %v431_v23 = vrot.slane %v430_v13, 2  ;;  %v605_v24 = vrot.slane %v604_v14, 2  ;;  %v610_v26 = vrot.slane %v609_v16, 4  ;;  %v424_v29 = vmul.f32 %v401_v17, %v875_v52 }
 0x10d   :  { %v241_v27 = vadd.f32 %v240_v20, %v239_v9  ;;  %v598_v30 = vmul.f32 %v575_v18, %v871_v45  ;;  %v782_v31 = vpop.f32.mrb[10].mxu1  ;;  %v798_v32 = vpop.f32.mrb[10].mxu0  ;;  %v437_v35 = vadd.f32 %v436_v25, %v435_v15  ;;  %v248_v43 = vadd.f32 %v247_v8, %v246_v54 }
 0x10e   :  { %v432_v33 = vadd.f32 %v431_v23, %v430_v13  ;;  %v606_v34 = vadd.f32 %v605_v24, %v604_v14  ;;  %v611_v36 = vadd.f32 %v610_v26, %v609_v16  ;;  %v411_v37 = vpop.f32.mrb[11].mxu1  ;;  %v585_v38 = vpop.f32.mrb[11].mxu0  ;;  %v442_v40 = vadd.f32 %v425_v21, %v424_v29 }
 0x10f   :  { %v635_v39 = vsel %vm634_vm14, %v241_v27, %v234_v19  ;;  %v616_v41 = vadd.f32 %v599_v22, %v598_v30  ;;  %v427_v42 = vmul.f32 %v782_v31, %v877_v53  ;;  %v438_v47 = vrot.slane %v437_v35, 2 }
 0x110   :  { %v433_v44 = vrot.slane %v432_v33, 1  ;;  %v612_v48 = vrot.slane %v611_v36, 2  ;;  %v443_v49 = vrot.slane %v442_v40, 4  ;;  %v601_v51 = vmul.f32 %v798_v32, %v873_v46 }
 0x111   :  { %v617_v50 = vrot.slane %v616_v41, 4  ;;  %v426_v55 = vmul.f32 %v411_v37, %v875_v52  ;;  %v255_v56 = vadd.f32 %v254_v28, %v253_v10  ;;  %v607_v57 = vrot.slane %v606_v34, 1 }
 0x112   :  { %v439_v58 = vadd.f32 %v438_v47, %v437_v35  ;;  %v613_v59 = vadd.f32 %v612_v48, %v611_v36  ;;  %v444_v60 = vadd.f32 %v443_v49, %v442_v40  ;;  %v600_v63 = vmul.f32 %v585_v38, %v871_v45 }
 0x113   :  { %v618_v61 = vadd.f32 %v617_v50, %v616_v41  ;;  %v449_v62 = vadd.f32 %v427_v42, %v426_v55  ;;  %v434_v53 = vadd.f32 %v433_v44, %v432_v33  ;;  %v637_v1 = vsel %vm636_vm15, %v248_v43, %v635_v39 }
 0x114   :  { %v440_v54 = vrot.slane %v439_v58, 1  ;;  %v614_v0 = vrot.slane %v613_v59, 1  ;;  %v445_v2 = vrot.slane %v444_v60, 2  ;;  %v623_v46 = vadd.f32 %v601_v51, %v600_v63 }
 0x115   :  { %v619_v3 = vrot.slane %v618_v61, 2  ;;  %v450_v4 = vrot.slane %v449_v62, 4  ;;  %v608_v5 = vadd.f32 %v607_v57, %v606_v34  ;;  %v639_v7 = vsel %vm638_vm0, %v255_v56, %v637_v1 }
 0x116   :  { %v441_v52 = vadd.f32 %v440_v54, %v439_v58  ;;  %v615_v6 = vadd.f32 %v614_v0, %v613_v59  ;;  %v446_v8 = vadd.f32 %v445_v2, %v444_v60  ;;  %v624_v11 = vrot.slane %v623_v46, 4 }
 0x117   :  { %v620_v9 = vadd.f32 %v619_v3, %v618_v61  ;;  %v451_v10 = vadd.f32 %v450_v4, %v449_v62 }
 0x118   :  { %v646_v45 = vsel %vm645_vm1, %v441_v52, %v434_v53  ;;  %v656_v12 = vsel %vm634_vm14, %v615_v6, %v608_v5  ;;  %v447_v13 = vrot.slane %v446_v8, 1  ;;  %v625_v16 = vadd.f32 %v624_v11, %v623_v46 }
 0x119   :  { %v621_v14 = vrot.slane %v620_v9, 1  ;;  %v452_v15 = vrot.slane %v451_v10, 2 }
 0x11a   :  { %v448_v17 = vadd.f32 %v447_v13, %v446_v8  ;;  %v626_v20 = vrot.slane %v625_v16, 2 }
 0x11b   :  { %v622_v18 = vadd.f32 %v621_v14, %v620_v9  ;;  %v453_v19 = vadd.f32 %v452_v15, %v451_v10 }
 0x11c   :  { %v648_v21 = vsel %vm647_vm2, %v448_v17, %v646_v45  ;;  %v627_v23 = vadd.f32 %v626_v20, %v625_v16 }
 0x11d   :  { %v454_v22 = vrot.slane %v453_v19, 1  ;;  %v657_v24 = vsel %vm636_vm15, %v622_v18, %v656_v12 }
 0x11e   :  { %v628_v26 = vrot.slane %v627_v23, 1 }
 0x11f   :  { %v455_v25 = vadd.f32 %v454_v22, %v453_v19 }
 0x120   :  { %v629_v27 = vadd.f32 %v628_v26, %v627_v23 }
 0x121   :  { %v650_v28 = vsel %vm649_vm3, %v455_v25, %v648_v21 }
 0x122   :  { %v661_v29 = vsel %vm660_vm4, %v639_v7, %v650_v28  ;;  %v658_v30 = vsel %vm638_vm0, %v629_v27, %v657_v24 }
 0x123   :  { %662 = vst [vmem:[#allocation2] sm:$0xff] %v661_v29  ;;  %663 = vst [vmem:[#allocation2 + $0x8] sm:$0xf] %v658_v30 }
 0x124   :  { %829 = shalt.err (!%p826_p4)
}
 0x125   :  { %s830_s5 = scalar_lea.hbm %s1014_s2, 256 }
 0x126   :  { %p831_p5 = scmp.ne.s32.totalorder %s1014_s2, %s830_s5  ;;  %p834_p6 = scmp.lt.u32.totalorder %s830_s5, %s1014_s2 }
 0x128   :  { %p836_p7 = pnand %p834_p6, %p831_p5 }
 0x12a   :  { %839 = shalt.err (!%p836_p7)
}
 0x12b   :  { %s843_s10 = smov 128   ;;  %s844_s11 = smov 8  }
 0x12c   :  { %675 = dma.vmem_to_hbm [thread:$0]  %s670_s29, 256, %s1014_s2, [#allocation3], %s843_s10, %s843_s10, %s844_s11  }
 0x12d   :  { %840 = dma.done.wait [#allocation3], 256  }
 0x12e   :  { %841 = vsyncadd [#allocation3], 4294967040 }
 0x12f   :  { %679 = vsyncpa [#allocation3], 1 }

</bundles_post_ra>
